<compile_context>
chip_gen: v7x
topology: tpu7x:2x2x1
jax: 0.10.0
libtpu: 0.0.40
codegen_flags: <defaults>
</compile_context>

<pallas_src>
import jax
import jax.numpy as jnp
from jax.experimental import pallas as pl
from jax.experimental.pallas import tpu as pltpu

# Pendulum-v1 dims (from the reference script)
STATE_DIM = 3
ACTION_DIM = 1
HIDDEN_DIM = 128

_SINGLE_TILE_MAX_B = 2048   # up to here: one grid step, per-step overhead dominates
_MAX_TILE_B = 4096          # caps per-step f32 activations (~2*TB*128*4 B) for v7x VMEM


def _round_up(n, m):
    return ((n + m - 1) // m) * m


def _pick_tile_b(batch):
    """Batch tile selection (see module docstring)."""
    if batch <= _SINGLE_TILE_MAX_B:
        # Single block spanning the full array: no padding, no (8,128) constraint.
        return batch
    # >= 2 grid steps so the "parallel" axis can shard across v7x's two TensorCores;
    # lane-aligned (multiple of 128) and capped so activations stay a few MiB.
    n_tiles = max(2, -(-batch // _MAX_TILE_B))
    tile = _round_up(-(-batch // n_tiles), 128)
    return min(tile, _MAX_TILE_B)


def _qvalue_kernel(xt_ref, at_ref, w1xt_ref, w1at_ref, b1_ref,
                   w2t_ref, b2_ref, w3_ref, b3_ref, out_ref):
    # fc1: K is tiny (4), so the MXU is a waste; VPU outer products in f32.
    # (H,1) * (1,TB) broadcasts, accumulated over the state / action features.
    acc = w1xt_ref[:, 0:1] * xt_ref[0:1, :]
    for s in range(1, xt_ref.shape[0]):
        acc = acc + w1xt_ref[:, s:s + 1] * xt_ref[s:s + 1, :]
    for t in range(at_ref.shape[0]):
        acc = acc + w1at_ref[:, t:t + 1] * at_ref[t:t + 1, :]
    h1 = jnp.maximum(acc + b1_ref[...], 0.0)                        # (H, TB) f32

    # fc2: bf16 MXU matmul, f32 accumulation.  N = TB lanes -> full MXU width.
    h2 = jnp.dot(w2t_ref[...], h1.astype(w2t_ref.dtype),
                 preferred_element_type=jnp.float32)
    h2 = jnp.maximum(h2 + b2_ref[...], 0.0)                         # (H, TB) f32

    # fc_out (1 unit): VPU multiply + sublane reduce -> lane-dense (1, TB) row.
    q = jnp.sum(h2 * w3_ref[...], axis=0, keepdims=True)            # (1, TB) f32
    out_ref[...] = (q + b3_ref[0]).astype(out_ref.dtype)


def init_params(key, state_dim, hidden_dim, action_dim):
    """Deterministic init mimicking torch.nn.Linear (U(-1/sqrt(fan_in), +...)).

    Returns f32 params in (fan_in, fan_out) layout; biases are (1, fan_out).
    """
    def linear(key, fan_in, fan_out):
        k_w, k_b = jax.random.split(key)
        bound = 1.0 / jnp.sqrt(fan_in)
        w = jax.random.uniform(k_w, (fan_in, fan_out), jnp.float32, -bound, bound)
        b = jax.random.uniform(k_b, (1, fan_out), jnp.float32, -bound, bound)
        return w, b

    k1, k2, k3 = jax.random.split(key, 3)
    w1, b1 = linear(k1, state_dim + action_dim, hidden_dim)
    w2, b2 = linear(k2, hidden_dim, hidden_dim)
    w3, b3 = linear(k3, hidden_dim, 1)
    return (w1, b1, w2, b2, w3, b3)


def prepare_params(params, state_dim=STATE_DIM, compute_dtype=jnp.bfloat16):
    """One-time conversion to the kernel's transposed (feature-major) layout.

    W1 is split into its state / action rows (torch's cat() folded away); only W2
    is cast to bf16 (MXU operand), everything else stays f32.
    """
    w1, b1, w2, b2, w3, b3 = params
    w1xt = w1[:state_dim].T.astype(jnp.float32)          # (H, S)
    w1at = w1[state_dim:].T.astype(jnp.float32)          # (H, A)
    b1c = b1.reshape(-1, 1).astype(jnp.float32)          # (H, 1)
    w2t = w2.T.astype(compute_dtype)                     # (H, H) bf16
    b2c = b2.reshape(-1, 1).astype(jnp.float32)          # (H, 1)
    w3c = w3.astype(jnp.float32)                         # (H, 1)
    b3s = b3.reshape(-1).astype(jnp.float32)             # (1,)  SMEM scalar
    return (w1xt, w1at, b1c, w2t, b2c, w3c, b3s)


def qvalue_net_forward(x, a, kparams, *, tile_b=None):
    """x: (B, state_dim) f32, a: (B, action_dim) f32 -> (B, 1) f32."""
    w1xt, w1at, b1c, w2t, b2c, w3c, b3s = kparams
    batch = x.shape[0]
    h_dim, s_dim = w1xt.shape
    a_dim = w1at.shape[1]

    if tile_b is None:
        tile_b = _pick_tile_b(batch)
    padded = _round_up(batch, tile_b)
    num_tiles = padded // tile_b

    # Feature-major inputs for the batch-on-lanes kernel.  x.T is a tiny (B,3)
    # transpose; a.T of a (B,1) array is a free reshape.  No casts, no pad in the
    # common (single-tile) path.
    xt = jnp.asarray(x, jnp.float32).T                    # (S, B)
    at = jnp.asarray(a, jnp.float32).T                    # (A, B)
    if padded != batch:
        pad = padded - batch
        xt = jnp.pad(xt, ((0, 0), (0, pad)))
        at = jnp.pad(at, ((0, 0), (0, pad)))

    def stream_spec(rows):
        return pl.BlockSpec((rows, tile_b), lambda i: (0, i))

    def fixed_spec(shape):
        # Same block every grid step -> stays VMEM-resident.
        return pl.BlockSpec(shape, lambda i: (0, 0))

    out = pl.pallas_call(
        _qvalue_kernel,
        out_shape=jax.ShapeDtypeStruct((1, padded), jnp.float32),
        grid=(num_tiles,),
        in_specs=[
            stream_spec(s_dim),                           # x^T        (S, padded)
            stream_spec(a_dim),                           # a^T        (A, padded)
            fixed_spec((h_dim, s_dim)),                   # W1_x^T     f32
            fixed_spec((h_dim, a_dim)),                   # W1_a^T     f32
            fixed_spec((h_dim, 1)),                       # b1 column  f32
            fixed_spec((h_dim, h_dim)),                   # W2^T       bf16
            fixed_spec((h_dim, 1)),                       # b2 column  f32
            fixed_spec((h_dim, 1)),                       # w3 column  f32
            pl.BlockSpec(memory_space=pltpu.MemorySpace.SMEM),  # b3 scalar
        ],
        out_specs=pl.BlockSpec((1, tile_b), lambda i: (0, i)),
        compiler_params=pltpu.CompilerParams(
            dimension_semantics=("parallel",),            # shards batch tiles on v7x
            vmem_limit_bytes=32 * 1024 * 1024),
    )(xt, at, w1xt, w1at, b1c, w2t, b2c, w3c, b3s)

    # (1, padded) -> (padded, 1) is a layout-trivial reshape; drop pad rows.
    return out.reshape(padded, 1)[:batch]


if __name__ == "__main__":
    key = jax.random.PRNGKey(0)
    k_params, k_x, k_a = jax.random.split(key, 3)

    batch = 8
    params = init_params(k_params, STATE_DIM, HIDDEN_DIM, ACTION_DIM)
    kparams = prepare_params(params, STATE_DIM)

    x = jax.random.normal(k_x, (batch, STATE_DIM), jnp.float32)
    a = jax.random.uniform(k_a, (batch, ACTION_DIM), jnp.float32, -2.0, 2.0)

    q = qvalue_net_forward(x, a, kparams)
    jax.block_until_ready(q)

    # Pure-JAX f32 reference of the torch semantics (cat -> 3x Linear, relu).
    w1, b1, w2, b2, w3, b3 = params
    xa = jnp.concatenate([x, a], axis=1)
    ref = jnp.maximum(xa @ w1 + b1, 0.0)
    ref = jnp.maximum(ref @ w2 + b2, 0.0)
    ref = ref @ w3 + b3

    assert q.shape == (batch, 1)
    # fc1/head are f32; only h1/W2 are bf16 (f32 accumulation) -> loose tolerance.
    assert jnp.allclose(q, ref, atol=5e-2, rtol=5e-2), (q, ref)

    print("KERNEL_OK")
</pallas_src>

<mosaic_0001>
module attributes {stable_mosaic.version = 11 : i64} {
  func.func @_qvalue_kernel(%arg0: i32, %arg1: memref<3x8xf32, #tpu.memory_space<vmem>>, %arg2: memref<1x8xf32, #tpu.memory_space<vmem>>, %arg3: memref<128x3xf32, #tpu.memory_space<vmem>>, %arg4: memref<128x1xf32, #tpu.memory_space<vmem>>, %arg5: memref<128x1xf32, #tpu.memory_space<vmem>>, %arg6: memref<128x128xbf16, #tpu.memory_space<vmem>>, %arg7: memref<128x1xf32, #tpu.memory_space<vmem>>, %arg8: memref<128x1xf32, #tpu.memory_space<vmem>>, %arg9: memref<1xf32, #tpu.memory_space<smem>>, %arg10: memref<1x8xf32, #tpu.memory_space<vmem>>) attributes {dimension_semantics = [#tpu.dimension_semantics<parallel>], iteration_bounds = array<i64: 1>, scalar_prefetch = 0 : i64, scratch_operands = 0 : i64, tpu.core_type = #tpu.core_type<tc>, window_params = [{transform_indices = @transform_0, window_bounds = array<i64: 3, 8>}, {transform_indices = @transform_1, window_bounds = array<i64: 1, 8>}, {pipeline_mode = #tpu.pipeline_mode<synchronous>, transform_indices = @transform_2, window_bounds = array<i64: 128, 3>}, {pipeline_mode = #tpu.pipeline_mode<synchronous>, transform_indices = @transform_3, window_bounds = array<i64: 128, 1>}, {pipeline_mode = #tpu.pipeline_mode<synchronous>, transform_indices = @transform_4, window_bounds = array<i64: 128, 1>}, {pipeline_mode = #tpu.pipeline_mode<synchronous>, transform_indices = @transform_5, window_bounds = array<i64: 128, 128>}, {pipeline_mode = #tpu.pipeline_mode<synchronous>, transform_indices = @transform_6, window_bounds = array<i64: 128, 1>}, {pipeline_mode = #tpu.pipeline_mode<synchronous>, transform_indices = @transform_7, window_bounds = array<i64: 128, 1>}, {transform_indices = @transform_8, window_bounds = array<i64: 1>}, {transform_indices = @transform_9, window_bounds = array<i64: 1, 8>}]} {
    %c0 = arith.constant 0 : index
    %c0_0 = arith.constant 0 : index
    %0 = vector.load %arg3[%c0, %c0_0] : memref<128x3xf32, #tpu.memory_space<vmem>>, vector<128x1xf32>
    %c0_1 = arith.constant 0 : index
    %c0_2 = arith.constant 0 : index
    %1 = vector.load %arg1[%c0_1, %c0_2] : memref<3x8xf32, #tpu.memory_space<vmem>>, vector<1x8xf32>
    %2 = vector.broadcast %0 : vector<128x1xf32> to vector<128x8xf32>
    %3 = vector.broadcast %1 : vector<1x8xf32> to vector<128x8xf32>
    %4 = arith.mulf %2, %3 : vector<128x8xf32>
    %c0_3 = arith.constant 0 : index
    %c1 = arith.constant 1 : index
    %5 = vector.load %arg3[%c0_3, %c1] : memref<128x3xf32, #tpu.memory_space<vmem>>, vector<128x1xf32>
    %c1_4 = arith.constant 1 : index
    %c0_5 = arith.constant 0 : index
    %6 = vector.load %arg1[%c1_4, %c0_5] : memref<3x8xf32, #tpu.memory_space<vmem>>, vector<1x8xf32>
    %7 = vector.broadcast %5 : vector<128x1xf32> to vector<128x8xf32>
    %8 = vector.broadcast %6 : vector<1x8xf32> to vector<128x8xf32>
    %9 = arith.mulf %7, %8 : vector<128x8xf32>
    %10 = arith.addf %4, %9 : vector<128x8xf32>
    %c0_6 = arith.constant 0 : index
    %c2 = arith.constant 2 : index
    %11 = vector.load %arg3[%c0_6, %c2] : memref<128x3xf32, #tpu.memory_space<vmem>>, vector<128x1xf32>
    %c2_7 = arith.constant 2 : index
    %c0_8 = arith.constant 0 : index
    %12 = vector.load %arg1[%c2_7, %c0_8] : memref<3x8xf32, #tpu.memory_space<vmem>>, vector<1x8xf32>
    %13 = vector.broadcast %11 : vector<128x1xf32> to vector<128x8xf32>
    %14 = vector.broadcast %12 : vector<1x8xf32> to vector<128x8xf32>
    %15 = arith.mulf %13, %14 : vector<128x8xf32>
    %16 = arith.addf %10, %15 : vector<128x8xf32>
    %c0_9 = arith.constant 0 : index
    %c0_10 = arith.constant 0 : index
    %17 = vector.load %arg4[%c0_9, %c0_10] : memref<128x1xf32, #tpu.memory_space<vmem>>, vector<128x1xf32>
    %c0_11 = arith.constant 0 : index
    %c0_12 = arith.constant 0 : index
    %18 = vector.load %arg2[%c0_11, %c0_12] : memref<1x8xf32, #tpu.memory_space<vmem>>, vector<1x8xf32>
    %19 = vector.broadcast %17 : vector<128x1xf32> to vector<128x8xf32>
    %20 = vector.broadcast %18 : vector<1x8xf32> to vector<128x8xf32>
    %21 = arith.mulf %19, %20 : vector<128x8xf32>
    %22 = arith.addf %16, %21 : vector<128x8xf32>
    %c0_13 = arith.constant 0 : index
    %c0_14 = arith.constant 0 : index
    %23 = vector.load %arg5[%c0_13, %c0_14] : memref<128x1xf32, #tpu.memory_space<vmem>>, vector<128x1xf32>
    %24 = vector.broadcast %23 : vector<128x1xf32> to vector<128x8xf32>
    %25 = arith.addf %22, %24 : vector<128x8xf32>
    %cst = arith.constant 0.000000e+00 : f32
    %26 = vector.broadcast %cst : f32 to vector<128x8xf32>
    %27 = arith.maximumf %25, %26 : vector<128x8xf32>
    %c0_15 = arith.constant 0 : index
    %c0_16 = arith.constant 0 : index
    %28 = vector.load %arg6[%c0_15, %c0_16] : memref<128x128xbf16, #tpu.memory_space<vmem>>, vector<128x128xbf16>
    %29 = arith.truncf %27 : vector<128x8xf32> to vector<128x8xbf16>
    %cst_17 = arith.constant dense<0.000000e+00> : vector<128x8xf32>
    %30 = tpu.matmul %28, %29, %cst_17 {dimension_numbers = #tpu.dot_dimension_numbers<[1], [0], [0], [1], [0, 0, 1, 1], [], []>} : vector<128x128xbf16>, vector<128x8xbf16>, vector<128x8xf32> -> vector<128x8xf32>
    %c0_18 = arith.constant 0 : index
    %c0_19 = arith.constant 0 : index
    %31 = vector.load %arg7[%c0_18, %c0_19] : memref<128x1xf32, #tpu.memory_space<vmem>>, vector<128x1xf32>
    %32 = vector.broadcast %31 : vector<128x1xf32> to vector<128x8xf32>
    %33 = arith.addf %30, %32 : vector<128x8xf32>
    %cst_20 = arith.constant 0.000000e+00 : f32
    %34 = vector.broadcast %cst_20 : f32 to vector<128x8xf32>
    %35 = arith.maximumf %33, %34 : vector<128x8xf32>
    %c0_21 = arith.constant 0 : index
    %c0_22 = arith.constant 0 : index
    %36 = vector.load %arg8[%c0_21, %c0_22] : memref<128x1xf32, #tpu.memory_space<vmem>>, vector<128x1xf32>
    %37 = vector.broadcast %36 : vector<128x1xf32> to vector<128x8xf32>
    %38 = arith.mulf %35, %37 : vector<128x8xf32>
    %cst_23 = arith.constant dense<0.000000e+00> : vector<8xf32>
    %39 = vector.multi_reduction <add>, %38, %cst_23 [0] : vector<128x8xf32> to vector<8xf32>
    %40 = vector.shape_cast %39 : vector<8xf32> to vector<1x8xf32>
    %c0_24 = arith.constant 0 : index
    %41 = memref.load %arg9[%c0_24] : memref<1xf32, #tpu.memory_space<smem>>
    %42 = vector.broadcast %41 : f32 to vector<1x8xf32>
    %43 = arith.addf %40, %42 : vector<1x8xf32>
    %c0_25 = arith.constant 0 : index
    %c0_26 = arith.constant 0 : index
    %44 = vector.load %arg10[%c0_25, %c0_26] : memref<1x8xf32, #tpu.memory_space<vmem>>, vector<1x8xf32>
    tpu.vector_store %arg10[%c0_25, %c0_26], %43 {strides = array<i32>} : memref<1x8xf32, #tpu.memory_space<vmem>>, vector<1x8xf32>,
    return
  }
  func.func @transform_0(%arg0: i32) -> (i32, i32) {
    %c0_i32 = arith.constant 0 : i32
    %c0_i32_0 = arith.constant 0 : i32
    return %c0_i32, %arg0 : i32, i32
  }
  func.func @transform_1(%arg0: i32) -> (i32, i32) {
    %c0_i32 = arith.constant 0 : i32
    %c0_i32_0 = arith.constant 0 : i32
    return %c0_i32, %arg0 : i32, i32
  }
  func.func @transform_2(%arg0: i32) -> (i32, i32) {
    %c0_i32 = arith.constant 0 : i32
    %c0_i32_0 = arith.constant 0 : i32
    %c0_i32_1 = arith.constant 0 : i32
    return %c0_i32, %c0_i32_0 : i32, i32
  }
  func.func @transform_3(%arg0: i32) -> (i32, i32) {
    %c0_i32 = arith.constant 0 : i32
    %c0_i32_0 = arith.constant 0 : i32
    %c0_i32_1 = arith.constant 0 : i32
    return %c0_i32, %c0_i32_0 : i32, i32
  }
  func.func @transform_4(%arg0: i32) -> (i32, i32) {
    %c0_i32 = arith.constant 0 : i32
    %c0_i32_0 = arith.constant 0 : i32
    %c0_i32_1 = arith.constant 0 : i32
    return %c0_i32, %c0_i32_0 : i32, i32
  }
  func.func @transform_5(%arg0: i32) -> (i32, i32) {
    %c0_i32 = arith.constant 0 : i32
    %c0_i32_0 = arith.constant 0 : i32
    %c0_i32_1 = arith.constant 0 : i32
    return %c0_i32, %c0_i32_0 : i32, i32
  }
  func.func @transform_6(%arg0: i32) -> (i32, i32) {
    %c0_i32 = arith.constant 0 : i32
    %c0_i32_0 = arith.constant 0 : i32
    %c0_i32_1 = arith.constant 0 : i32
    return %c0_i32, %c0_i32_0 : i32, i32
  }
  func.func @transform_7(%arg0: i32) -> (i32, i32) {
    %c0_i32 = arith.constant 0 : i32
    %c0_i32_0 = arith.constant 0 : i32
    %c0_i32_1 = arith.constant 0 : i32
    return %c0_i32, %c0_i32_0 : i32, i32
  }
  func.func @transform_8(%arg0: i32) -> i32 {
    %c0_i32 = arith.constant 0 : i32
    %c0_i32_0 = arith.constant 0 : i32
    return %c0_i32 : i32
  }
  func.func @transform_9(%arg0: i32) -> (i32, i32) {
    %c0_i32 = arith.constant 0 : i32
    %c0_i32_0 = arith.constant 0 : i32
    return %c0_i32, %arg0 : i32, i32
  }
}

</mosaic_0001>

<bundles_post_ra>
// kernel: tpu_custom_call.1
= control target key start
LH: loop header
LB: loop body
LE: loop exit
PB: predicated region body
PF: predicated region fallthrough
CT: control target
= control target key end

     0   :  { %v1207_v2 = vmov 1   ;;  %v1208_v3 = vmov 0   ;;  %v1209_v6 = vmov 2   ;;  %s1827_s0 = inlined_call_operand.vmem [shape: f32[3,8], index: 0, kind: input, shape index: {}]   ;;  %s1828_s1 = inlined_call_operand.vmem [shape: f32[1,8], index: 1, kind: input, shape index: {}]   ;;  %s1829_s2 = inlined_call_operand.vmem [shape: f32[128,3], index: 2, kind: input, shape index: {}]   ;;  %s1830_s3 = inlined_call_operand.vmem [shape: f32[128,1], index: 3, kind: input, shape index: {}]   ;;  %s1831_s4 = inlined_call_operand.vmem [shape: f32[128,1], index: 4, kind: input, shape index: {}]   ;;  %s1832_s5 = inlined_call_operand.vmem [shape: bf16[128,128], index: 5, kind: input, shape index: {}]   ;;  %s1833_s6 = inlined_call_operand.vmem [shape: f32[128,1], index: 6, kind: input, shape index: {}]   ;;  %s1834_s7 = inlined_call_operand.vmem [shape: f32[128,1], index: 7, kind: input, shape index: {}]   ;;  %s1835_s8 = inlined_call_operand.<no memory space> [shape: f32[1], index: 8, kind: input, shape index: {}]   ;;  %s1836_s9 = inlined_call_operand.hbm [shape: f32[1,8], index: 9, kind: output, shape index: {}]  }
   0x1   :  { %v37_v0 = vld [vmem:[%s1829_s2 + $0x10] sm:$0xff]  ;;  %v35_v1 = vld [vmem:[%s1829_s2] sm:$0xff]  ;;  %1148 = vset.pattern.permute.xlu0 %v1207_v2  ;;  %1147 = vset.pattern.permute.xlu1 %v1208_v3  ;;  %v38_v4 = vld [vmem:[%s1829_s2 + $0x18] sm:$0xff] }
   0x2   :  { %64 = vperm.xlu1 %1147, %v37_v0   ;;  %154 = vperm.xlu0 %1148, %v35_v1   ;;  %v36_v5 = vld [vmem:[%s1829_s2 + $0x8] sm:$0xff]  ;;  %v1282_v8 = vld [vmem:[%s1829_s2 + $0x38] sm:$0xff] }
   0x3   :  { %v40_v7 = vld [vmem:[%s1829_s2 + $0x28] sm:$0xff]  ;;  %v1295_v10 = vld [vmem:[%s1829_s2 + $0x58] sm:$0xff] }
   0x4   :  { %v1288_v9 = vld [vmem:[%s1829_s2 + $0x48] sm:$0xff] }
   0x6   :  { %69 = vperm.xlu1 %1147, %v38_v4   ;;  %1151 = vset.pattern.permute.xlu0 %v1209_v6 }
   0x7   :  { %259 = vperm.xlu0 %1151, %v36_v5  }
   0xa   :  { %79 = vperm.xlu1 %1147, %v40_v7  }
   0xb   :  { %267 = vperm.xlu0 %1151, %v38_v4  }
   0xe   :  { %89 = vperm.xlu1 %1147, %v1282_v8  }
   0xf   :  { %275 = vperm.xlu0 %1151, %v40_v7  }
  0x12   :  { %99 = vperm.xlu1 %1147, %v1288_v9  }
  0x13   :  { %283 = vperm.xlu0 %1151, %v1282_v8  }
  0x14   :  { %15 = vsyncpa [#allocation4], 0  ;;  %v1302_v11 = vld [vmem:[%s1829_s2 + $0x68] sm:$0xff]  ;;  %v1309_v12 = vld [vmem:[%s1829_s2 + $0x78] sm:$0xff]  ;;  %vm1010_vm0 = vcmask 64512   ;;  %s1210_s28 = smov [#allocation3]  }
  0x15   :  { %v39_v13 = vld [vmem:[%s1829_s2 + $0x20] sm:$0xff]  ;;  %v41_v14 = vld [vmem:[%s1829_s2 + $0x30] sm:$0xff]  ;;  %v355_v15 = vld [vmem:[%s1830_s3 + $0x8] sm:$0xff]  ;;  %s1059_s29 = sshll.u32 %s1210_s28, 4  ;;  %vm1051_vm1 = vcmask 57344   ;;  %s1060_s29 = int_to_ptr.vmem [resolvable:$true] %s1059_s29 }
  0x16   :  { %109 = vperm.xlu1 %1147, %v1295_v10   ;;  %v1331_v16 = vld [vmem:[%s1829_s2 + $0x40] sm:$0xff]  ;;  %v1337_v17 = vld [vmem:[%s1829_s2 + $0x50] sm:$0xff]  ;;  %v357_v21 = vld [vmem:[%s1830_s3 + $0x18] sm:$0xff]  ;;  %s1183_s30 = scalar_lea.vmem %s1060_s29, 16  ;;  %s1187_s10 = scalar_lea.vmem %s1060_s29, 32 }
  0x17   :  { %291 = vperm.xlu0 %1151, %v1288_v9   ;;  %v1344_v18 = vld [vmem:[%s1829_s2 + $0x60] sm:$0xff]  ;;  %v1351_v19 = vld [vmem:[%s1829_s2 + $0x70] sm:$0xff]  ;;  %v490_v24 = vld [vmem:[%s1831_s4 + $0x8] sm:$0xff]  ;;  %p1184_p0 = scmp.ne.s32.totalorder %s1060_s29, %s1183_s30  ;;  %p1188_p1 = scmp.lt.s32.totalorder %s1060_s29, %s1060_s29 }
  0x18   :  { %v354_v20 = vld [vmem:[%s1830_s3] sm:$0xff]  ;;  %v356_v22 = vld [vmem:[%s1830_s3 + $0x10] sm:$0xff]  ;;  %v492_v26 = vld [vmem:[%s1831_s4 + $0x18] sm:$0xff]  ;;  %p1189_p2 = scmp.lt.s32.totalorder %s1187_s10, %s1183_s30 }
  0x19   :  { %v489_v23 = vld [vmem:[%s1831_s4] sm:$0xff]  ;;  %v360_v27 = vld [vmem:[%s1830_s3 + $0x30] sm:$0xff]  ;;  %v359_v28 = vld [vmem:[%s1830_s3 + $0x28] sm:$0xff] }
  0x1a   :  { %119 = vperm.xlu1 %1147, %v1302_v11   ;;  %v358_v25 = vld [vmem:[%s1830_s3 + $0x20] sm:$0xff]  ;;  %v494_v29 = vld [vmem:[%s1831_s4 + $0x28] sm:$0xff]  ;;  %v491_v30 = vld [vmem:[%s1831_s4 + $0x10] sm:$0xff]  ;;  %p1190_p3 = por %p1189_p2, %p1188_p1 }
  0x1b   :  { %299 = vperm.xlu0 %1151, %v1295_v10   ;;  %v362_v31 = vld [vmem:[%s1830_s3 + $0x40] sm:$0xff]  ;;  %v496_v32 = vld [vmem:[%s1831_s4 + $0x38] sm:$0xff]  ;;  %v364_v33 = vld [vmem:[%s1830_s3 + $0x50] sm:$0xff] }
  0x1c   :  { %v498_v34 = vld [vmem:[%s1831_s4 + $0x48] sm:$0xff]  ;;  %v366_v35 = vld [vmem:[%s1830_s3 + $0x60] sm:$0xff]  ;;  %v361_v36 = vld [vmem:[%s1830_s3 + $0x38] sm:$0xff]  ;;  %p1191_p4 = pnand %p1190_p3, %p1184_p0 }
  0x1d   :  { %v500_v37 = vld [vmem:[%s1831_s4 + $0x58] sm:$0xff]  ;;  %v493_v38 = vld [vmem:[%s1831_s4 + $0x20] sm:$0xff]  ;;  %v642_v43 = vld [vmem:[%s1833_s6 + $0x8] sm:$0xff] }
  0x1e   :  { %129 = vperm.xlu1 %1147, %v1309_v12   ;;  %v501_v39 = vld [vmem:[%s1831_s4 + $0x60] sm:$0xff]  ;;  %v504_v40 = vld [vmem:[%s1831_s4 + $0x78] sm:$0xff]  ;;  %v899_v48 = vld [vmem:[%s1834_s7 + $0x8] sm:$0xff] }
  0x1f   :  { %307 = vperm.xlu0 %1151, %v1302_v11   ;;  %v644_v45 = vld [vmem:[%s1833_s6 + $0x18] sm:$0xff]  ;;  %v363_v50 = vld [vmem:[%s1830_s3 + $0x48] sm:$0xff]  ;;  %v900_v52 = vld [vmem:[%s1834_s7 + $0x10] sm:$0xff] }
  0x20   :  { %v495_v54 = vld [vmem:[%s1831_s4 + $0x30] sm:$0xff]  ;;  %v901_v56 = vld [vmem:[%s1834_s7 + $0x18] sm:$0xff]  ;;  %v902_v59 = vld [vmem:[%s1834_s7 + $0x20] sm:$0xff] }
  0x21   :  { %v903_v62 = vld [vmem:[%s1834_s7 + $0x28] sm:$0xff] }
  0x22   :  { %1149 = vset.pattern.permute.xlu1 %v1207_v2 }
  0x23   :  { %158 = vperm.xlu1 %1149, %v36_v5   ;;  %315 = vperm.xlu0 %1151, %v1309_v12  }
  0x27   :  { %1150 = vset.pattern.permute.xlu1 %v1209_v6  ;;  %1173 = vset.pattern.permute.xlu0 %v1208_v3 }
  0x28   :  { %255 = vperm.xlu1 %1150, %v35_v1   ;;  %54 = vperm.xlu0 %1173, %v35_v1   ;;  %v904_v1 = vld [vmem:[%s1834_s7 + $0x30] sm:$0xff] }
  0x2c   :  { %1152 = vset.pattern.permute.xlu1 %v1207_v2  ;;  %59 = vperm.xlu0 %1173, %v36_v5   ;;  %v905_v5 = vld [vmem:[%s1834_s7 + $0x38] sm:$0xff] }
  0x2d   :  { %162 = vperm.xlu1 %1152, %v37_v0  }
  0x30   :  { %74 = vperm.xlu0 %1173, %v39_v13  }
  0x31   :  { %166 = vperm.xlu1 %1152, %v38_v4  }
  0x34   :  { %84 = vperm.xlu0 %1173, %v41_v14  }
  0x35   :  { %1153 = vset.pattern.permute.xlu1 %v1208_v3 }
  0x36   :  { %378 = vperm.xlu1 %1153, %v355_v15   ;;  %v907_v15 = vld [vmem:[%s1834_s7 + $0x48] sm:$0xff] }
  0x38   :  { %94 = vperm.xlu0 %1173, %v1331_v16  }
  0x3a   :  { %1154 = vset.pattern.permute.xlu1 %v1209_v6 }
  0x3b   :  { %263 = vperm.xlu1 %1154, %v37_v0  }
  0x3c   :  { %104 = vperm.xlu0 %1173, %v1337_v17  }
  0x3f   :  { %1155 = vset.pattern.permute.xlu1 %v1207_v2 }
  0x40   :  { %170 = vperm.xlu1 %1155, %v39_v13   ;;  %114 = vperm.xlu0 %1173, %v1344_v18  }
  0x44   :  { %174 = vperm.xlu1 %1155, %v40_v7   ;;  %124 = vperm.xlu0 %1173, %v1351_v19  }
  0x48   :  { %1156 = vset.pattern.permute.xlu1 %v1208_v3  ;;  %373 = vperm.xlu0 %1173, %v354_v20   ;;  %v908_v20 = vld [vmem:[%s1834_s7 + $0x50] sm:$0xff] }
  0x49   :  { %388 = vperm.xlu1 %1156, %v357_v21  }
  0x4c   :  { %383 = vperm.xlu0 %1173, %v356_v22  }
  0x4d   :  { %507 = vperm.xlu1 %1156, %v489_v23   ;;  %v909_v23 = vld [vmem:[%s1834_s7 + $0x58] sm:$0xff] }
  0x50   :  { %512 = vperm.xlu0 %1173, %v490_v24  }
  0x51   :  { %1157 = vset.pattern.permute.xlu1 %v1209_v6 }
  0x52   :  { %271 = vperm.xlu1 %1157, %v39_v13  }
  0x54   :  { %393 = vperm.xlu0 %1173, %v358_v25  }
  0x56   :  { %1158 = vset.pattern.permute.xlu1 %v1207_v2 }
  0x57   :  { %178 = vperm.xlu1 %1158, %v41_v14  }
  0x58   :  { %522 = vperm.xlu0 %1173, %v492_v26  }
  0x5b   :  { %182 = vperm.xlu1 %1158, %v1282_v8  }
  0x5c   :  { %403 = vperm.xlu0 %1173, %v360_v27   ;;  %v367_v27 = vld [vmem:[%s1830_s3 + $0x68] sm:$0xff] }
  0x5f   :  { %1159 = vset.pattern.permute.xlu1 %v1208_v3 }
  0x60   :  { %398 = vperm.xlu1 %1159, %v359_v28   ;;  %532 = vperm.xlu0 %1173, %v494_v29  }
  0x64   :  { %517 = vperm.xlu1 %1159, %v491_v30   ;;  %413 = vperm.xlu0 %1173, %v362_v31   ;;  %v913_v30 = vld [vmem:[%s1834_s7 + $0x78] sm:$0xff]  ;;  %v1562_v31 = vld [vmem:[%s1827_s0] ss:$0 sm:$0xff] }
  0x68   :  { %1160 = vset.pattern.permute.xlu1 %v1209_v6  ;;  %542 = vperm.xlu0 %1173, %v496_v32   ;;  %v1567_v32 = vld [vmem:[%s1827_s0 + $0x1] ss:$0 sm:$0xff] }
  0x69   :  { %279 = vperm.xlu1 %1160, %v41_v14  }
  0x6c   :  { %423 = vperm.xlu0 %1173, %v364_v33  }
  0x6d   :  { %1161 = vset.pattern.permute.xlu1 %v1207_v2 }
  0x6e   :  { %186 = vperm.xlu1 %1161, %v1331_v16  }
  0x70   :  { %552 = vperm.xlu0 %1173, %v498_v34  }
  0x72   :  { %190 = vperm.xlu1 %1161, %v1288_v9   ;;  %v365_v9 = vld [vmem:[%s1830_s3 + $0x58] sm:$0xff] }
  0x74   :  { %433 = vperm.xlu0 %1173, %v366_v35  }
  0x76   :  { %1162 = vset.pattern.permute.xlu1 %v1208_v3 }
  0x77   :  { %408 = vperm.xlu1 %1162, %v361_v36  }
  0x78   :  { %562 = vperm.xlu0 %1173, %v500_v37   ;;  %v1579_v37 = vld [vmem:[%s1827_s0 + $0x2] ss:$0 sm:$0xff] }
  0x7b   :  { %527 = vperm.xlu1 %1162, %v493_v38  }
  0x7c   :  { %567 = vperm.xlu0 %1173, %v501_v39  }
  0x7f   :  { %1163 = vset.pattern.permute.xlu1 %v1209_v6 }
  0x80   :  { %287 = vperm.xlu1 %1163, %v1331_v16   ;;  %582 = vperm.xlu0 %1173, %v504_v40  }
  0x81   :  { %v1429_v41 = vpop.permute.xlu1 %64  ;;  %v1431_v42 = vpop.permute.xlu0 %154 }
  0x82   :  { %v221_v35 = vmul.f32 %v1567_v32, %v1431_v42 }
  0x84   :  { %1164 = vset.pattern.permute.xlu1 %v1207_v2  ;;  %664 = vperm.xlu0 %1173, %v642_v43  }
  0x85   :  { %v1437_v44 = vpop.permute.xlu1 %69  ;;  %194 = vperm.xlu1 %1164, %v1337_v17  }
  0x86   :  { %v1443_v46 = vpop.permute.xlu0 %259 }
  0x88   :  { %674 = vperm.xlu0 %1173, %v644_v45  }
  0x89   :  { %v1445_v47 = vpop.permute.xlu1 %79  ;;  %198 = vperm.xlu1 %1164, %v1295_v10   ;;  %v906_v10 = vld [vmem:[%s1834_s7 + $0x40] sm:$0xff] }
  0x8a   :  { %v1451_v49 = vpop.permute.xlu0 %267 }
  0x8c   :  { %921 = vperm.xlu0 %1173, %v899_v48   ;;  %v1593_v48 = vld [vmem:[%s1828_s1] ss:$0 sm:$0xff] }
  0x8d   :  { %v1456_v51 = vpop.permute.xlu1 %89  ;;  %1165 = vset.pattern.permute.xlu1 %v1208_v3 }
  0x8e   :  { %418 = vperm.xlu1 %1165, %v363_v50   ;;  %v1462_v53 = vpop.permute.xlu0 %275 }
  0x90   :  { %926 = vperm.xlu0 %1173, %v900_v52   ;;  %v368_v52 = vld [vmem:[%s1830_s3 + $0x70] sm:$0xff] }
  0x91   :  { %v1467_v55 = vpop.permute.xlu1 %99 }
  0x92   :  { %537 = vperm.xlu1 %1165, %v495_v54   ;;  %v1472_v57 = vpop.permute.xlu0 %283  ;;  %v323_v54 = vmul.f32 %v1579_v37, %v1443_v46 }
  0x94   :  { %931 = vperm.xlu0 %1173, %v901_v56  }
  0x95   :  { %v1474_v58 = vpop.permute.xlu1 %109 }
  0x96   :  { %1166 = vset.pattern.permute.xlu1 %v1209_v6  ;;  %v1480_v60 = vpop.permute.xlu0 %291 }
  0x97   :  { %295 = vperm.xlu1 %1166, %v1337_v17  }
  0x98   :  { %936 = vperm.xlu0 %1173, %v902_v59  }
  0x99   :  { %v1483_v61 = vpop.permute.xlu1 %119 }
  0x9a   :  { %v1488_v63 = vpop.permute.xlu0 %299 }
  0x9b   :  { %1167 = vset.pattern.permute.xlu1 %v1207_v2 }
  0x9c   :  { %202 = vperm.xlu1 %1167, %v1344_v18   ;;  %941 = vperm.xlu0 %1173, %v903_v62  }
  0x9d   :  { %v1492_v0 = vpop.permute.xlu1 %129 }
  0x9e   :  { %v1497_v4 = vpop.permute.xlu0 %307 }
  0xa0   :  { %206 = vperm.xlu1 %1167, %v1302_v11   ;;  %946 = vperm.xlu0 %1173, %v904_v1   ;;  %v497_v11 = vld [vmem:[%s1831_s4 + $0x40] sm:$0xff] }
  0xa2   :  { %v159_v7 = vpop.permute.xlu1 %158  ;;  %v1503_v8 = vpop.permute.xlu0 %315 }
  0xa3   :  { %v222_v42 = vmul.f32 %v1567_v32, %v159_v7  ;;  %v369_v7 = vld [vmem:[%s1830_s3 + $0x78] sm:$0xff] }
  0xa4   :  { %1168 = vset.pattern.permute.xlu1 %v1208_v3  ;;  %951 = vperm.xlu0 %1173, %v905_v5  }
  0xa5   :  { %428 = vperm.xlu1 %1168, %v365_v9  }
  0xa7   :  { %v256_v13 = vpop.permute.xlu1 %255  ;;  %v55_v14 = vpop.permute.xlu0 %54 }
  0xa8   :  { %956 = vperm.xlu0 %1173, %v906_v10   ;;  %v136_v36 = vmul.f32 %v1562_v31, %v55_v14  ;;  %v322_v45 = vmul.f32 %v1579_v37, %v256_v13  ;;  %v502_v14 = vld [vmem:[%s1831_s4 + $0x68] sm:$0xff] }
  0xa9   :  { %547 = vperm.xlu1 %1168, %v497_v11  }
  0xaa   :  { %v237_v40 = vadd.f32 %v221_v35, %v136_v36  ;;  %v325_v35 = vmul.f32 %v1579_v37, %v1451_v49  ;;  %v1175_v49 = vld [vmem:[%s1832_s5] sm:$0xff]  }
  0xab   :  { %v60_v16 = vpop.permute.xlu0 %59  ;;  %1111 = vmatprep.mubr.bf16.mxu0 %v1175_v49 }
  0xac   :  { %v1518_v17 = vpop.permute.xlu1 %162  ;;  %961 = vperm.xlu0 %1173, %v907_v15   ;;  %v137_v43 = vmul.f32 %v1562_v31, %v60_v16  ;;  %v338_v59 = vadd.f32 %v322_v45, %v237_v40 }
  0xad   :  { %1169 = vset.pattern.permute.xlu1 %v1209_v6 }
  0xae   :  { %303 = vperm.xlu1 %1169, %v1344_v18   ;;  %v910_v18 = vld [vmem:[%s1834_s7 + $0x60] sm:$0xff] }
  0xaf   :  { %v1525_v21 = vpop.permute.xlu0 %74 }
  0xb0   :  { %v1527_v22 = vpop.permute.xlu1 %166  ;;  %966 = vperm.xlu0 %1173, %v908_v20  }
  0xb2   :  { %1170 = vset.pattern.permute.xlu1 %v1207_v2  ;;  %v911_v2 = vld [vmem:[%s1834_s7 + $0x68] sm:$0xff] }
  0xb3   :  { %210 = vperm.xlu1 %1170, %v1351_v19   ;;  %v1534_v24 = vpop.permute.xlu0 %84 }
  0xb4   :  { %971 = vperm.xlu0 %1173, %v909_v23   ;;  %v503_v23 = vld [vmem:[%s1831_s4 + $0x70] sm:$0xff] }
  0xb5   :  { %v379_v25 = vpop.permute.xlu1 %378 }
  0xb6   :  { %v458_v62 = vmul.f32 %v1593_v48, %v379_v25 }
  0xb7   :  { %214 = vperm.xlu1 %1170, %v1309_v12   ;;  %v1540_v26 = vpop.permute.xlu0 %94  ;;  %v499_v12 = vld [vmem:[%s1831_s4 + $0x50] sm:$0xff] }
  0xb8   :  { %976 = vperm.xlu0 %1173, %v910_v18   ;;  %v224_v18 = vmul.f32 %v1567_v32, %v1527_v22  ;;  %v223_v22 = vmul.f32 %v1567_v32, %v1518_v17  ;;  %v1176_v17 = vld [vmem:[%s1832_s5 + $0x20] sm:$0xff]  }
  0xb9   :  { %1119 = vmatprep.mubr.bf16.mxu1 %v1176_v17 }
  0xba   :  { %v1548_v28 = vpop.permute.xlu1 %263 }
  0xbb   :  { %1171 = vset.pattern.permute.xlu1 %v1208_v3  ;;  %v1551_v29 = vpop.permute.xlu0 %104 }
  0xbc   :  { %438 = vperm.xlu1 %1171, %v367_v27   ;;  %981 = vperm.xlu0 %1173, %v911_v2   ;;  %v641_v2 = vld [vmem:[%s1833_s6] sm:$0xff] }
  0xbf   :  { %v1569_v33 = vpop.permute.xlu1 %170  ;;  %v1571_v34 = vpop.permute.xlu0 %114 }
  0xc0   :  { %557 = vperm.xlu1 %1171, %v499_v12   ;;  %991 = vperm.xlu0 %1173, %v913_v30   ;;  %v139_v12 = vmul.f32 %v1562_v31, %v1437_v44  ;;  %v324_v44 = vmul.f32 %v1579_v37, %v1548_v28  ;;  %v898_v28 = vld [vmem:[%s1834_s7] sm:$0xff] }
  0xc2   :  { %v240_v36 = vadd.f32 %v224_v18, %v139_v12 }
  0xc3   :  { %v1581_v38 = vpop.permute.xlu1 %174  ;;  %v1583_v39 = vpop.permute.xlu0 %124 }
  0xc4   :  { %1172 = vset.pattern.permute.xlu1 %v1209_v6  ;;  %v238_v6 = vadd.f32 %v222_v42, %v137_v43  ;;  %v643_v43 = vld [vmem:[%s1833_s6 + $0x10] sm:$0xff]  ;;  %v138_v42 = vmul.f32 %v1562_v31, %v1429_v41 }
  0xc5   :  { %311 = vperm.xlu1 %1172, %v1351_v19  }
  0xc6   :  { %v339_v10 = vadd.f32 %v323_v54, %v238_v6  ;;  %v341_v54 = vadd.f32 %v325_v35, %v240_v36 }
  0xc7   :  { %v374_v50 = vpop.permute.xlu0 %373 }
  0xc8   :  { %v457_v19 = vmul.f32 %v1593_v48, %v374_v50  ;;  %v389_v56 = vpop.permute.xlu1 %388  ;;  %v474_v46 = vadd.f32 %v458_v62, %v339_v10  ;;  %v239_v50 = vadd.f32 %v223_v22, %v138_v42 }
  0xc9   :  { %1174 = vset.pattern.permute.xlu1 %v1208_v3  ;;  %v460_v45 = vmul.f32 %v1593_v48, %v389_v56 }
  0xca   :  { %443 = vperm.xlu1 %1174, %v368_v52   ;;  %v473_v1 = vadd.f32 %v457_v19, %v338_v59  ;;  %v340_v19 = vadd.f32 %v324_v44, %v239_v50 }
  0xcb   :  { %v384_v5 = vpop.permute.xlu0 %383  ;;  %v476_v56 = vadd.f32 %v460_v45, %v341_v54  ;;  %v651_v54 = vld [vmem:[%s1833_s6 + $0x50] sm:$0xff] }
  0xcc   :  { %v508_v9 = vpop.permute.xlu1 %507  ;;  %v459_v52 = vmul.f32 %v1593_v48, %v384_v5  ;;  %v645_v5 = vld [vmem:[%s1833_s6 + $0x20] sm:$0xff] }
  0xcd   :  { %v585_v11 = vadd.f32 %v508_v9, %v473_v1 }
  0xce   :  { %448 = vperm.xlu1 %1174, %v369_v7   ;;  %v475_v62 = vadd.f32 %v459_v52, %v340_v19  ;;  %v652_v19 = vld [vmem:[%s1833_s6 + $0x58] sm:$0xff] }
  0xcf   :  { %v513_v13 = vpop.permute.xlu0 %512  ;;  %v601_v16 = vmax.f32 %v585_v11, 0.0  ;;  %v646_v11 = vld [vmem:[%s1833_s6 + $0x28] sm:$0xff] }
  0xd0   :  { %v586_v3 = vadd.f32 %v513_v13, %v474_v46 }
  0xd1   :  { %v1609_v15 = vpop.permute.xlu1 %271 }
  0xd2   :  { %v602_v20 = vmax.f32 %v586_v3, 0.0  ;;  %572 = vperm.xlu1 %1174, %v502_v14   ;;  %v226_v14 = vmul.f32 %v1567_v32, %v1581_v38  ;;  %v647_v3 = vld [vmem:[%s1833_s6 + $0x30] sm:$0xff]  ;;  %v225_v38 = vmul.f32 %v1567_v32, %v1569_v33 }
  0xd3   :  { %v394_v30 = vpop.permute.xlu0 %393 }
  0xd4   :  { %v633_v25 = vpack.c.bf16 %v602_v20, %v601_v16  ;;  %v141_v16 = vmul.f32 %v1562_v31, %v1445_v47  ;;  %v326_v47 = vmul.f32 %v1579_v37, %v1609_v15  ;;  %v650_v15 = vld [vmem:[%s1833_s6 + $0x48] sm:$0xff] }
  0xd6   :  { %577 = vperm.xlu1 %1174, %v503_v23   ;;  %v1616_v27 = vpop.permute.xlu1 %178  ;;  %1095 = vmatprep.subr.bf16.mxu0 %v633_v25  ;;  %v327_v23 = vmul.f32 %v1579_v37, %v1462_v53  ;;  %v242_v18 = vadd.f32 %v226_v14, %v141_v16 }
  0xd7   :  { %1127 = vmatprep.subr.bf16.mxu1 %v633_v25  ;;  %1096 = vmatpush3.bf16.msra.mxu0 %v633_v25  ;;  %v523_v6 = vpop.permute.xlu0 %522 }
  0xd8   :  { %1135 = vmatpush3.bf16.msra.mxu1 %v633_v25  ;;  %v588_v59 = vadd.f32 %v523_v6, %v476_v56  ;;  %v140_v25 = vmul.f32 %v1562_v31, %v1525_v21  ;;  %v343_v36 = vadd.f32 %v327_v23, %v242_v18  ;;  %v649_v21 = vld [vmem:[%s1833_s6 + $0x40] sm:$0xff] }
  0xda   :  { %659 = vperm.xlu1 %1174, %v641_v2   ;;  %v1627_v40 = vpop.permute.xlu1 %182  ;;  %v604_v9 = vmax.f32 %v588_v59, 0.0  ;;  %v648_v2 = vld [vmem:[%s1833_s6 + $0x38] sm:$0xff]  ;;  %v241_v53 = vadd.f32 %v225_v38, %v140_v25  ;;  %v653_v59 = vld [vmem:[%s1833_s6 + $0x60] sm:$0xff] }
  0xdb   :  { %v404_v22 = vpop.permute.xlu0 %403  ;;  %v228_v56 = vmul.f32 %v1567_v32, %v1627_v40  ;;  %v227_v40 = vmul.f32 %v1567_v32, %v1616_v27 }
  0xdc   :  { %v342_v33 = vadd.f32 %v326_v47, %v241_v53  ;;  %v463_v27 = vmul.f32 %v1593_v48, %v404_v22  ;;  %v912_v53 = vld [vmem:[%s1834_s7 + $0x70] sm:$0xff] }
  0xde   :  { %669 = vperm.xlu1 %1174, %v643_v43   ;;  %v461_v43 = vmul.f32 %v1593_v48, %v394_v30 }
  0xdf   :  { %v399_v41 = vpop.permute.xlu1 %398  ;;  %v533_v45 = vpop.permute.xlu0 %532 }
  0xe0   :  { %v462_v12 = vmul.f32 %v1593_v48, %v399_v41  ;;  %v477_v17 = vadd.f32 %v461_v43, %v342_v33 }
  0xe2   :  { %916 = vperm.xlu1 %1174, %v898_v28   ;;  %v478_v42 = vadd.f32 %v462_v12, %v343_v36 }
  0xe3   :  { %v518_v1 = vpop.permute.xlu1 %517  ;;  %v414_v14 = vpop.permute.xlu0 %413 }
  0xe4   :  { %v587_v7 = vadd.f32 %v518_v1, %v475_v62  ;;  %v590_v49 = vadd.f32 %v533_v45, %v478_v42  ;;  %v143_v62 = vmul.f32 %v1562_v31, %v1456_v51  ;;  %v145_v42 = vmul.f32 %v1562_v31, %v1467_v55 }
  0xe6   :  { %v603_v10 = vmax.f32 %v587_v7, 0.0  ;;  %679 = vperm.xlu1 %1174, %v645_v5   ;;  %v606_v6 = vmax.f32 %v590_v49, 0.0  ;;  %v329_v5 = vmul.f32 %v1579_v37, %v1472_v57  ;;  %v142_v7 = vmul.f32 %v1562_v31, %v1534_v24  ;;  %v655_v24 = vld [vmem:[%s1833_s6 + $0x70] sm:$0xff] }
  0xe7   :  { %v543_v38 = vpop.permute.xlu0 %542 }
  0xe8   :  { %v634_v46 = vpack.c.bf16 %v604_v9, %v603_v10  ;;  %v280_v13 = vpop.permute.xlu1 %279  ;;  %v244_v9 = vadd.f32 %v228_v56, %v143_v62  ;;  %v654_v10 = vld [vmem:[%s1833_s6 + $0x68] sm:$0xff] }
  0xea   :  { %684 = vperm.xlu1 %1174, %v646_v11   ;;  %1097 = vmatprep.subr.bf16.mxu0 %v634_v46  ;;  %v328_v11 = vmul.f32 %v1579_v37, %v280_v13  ;;  %v345_v57 = vadd.f32 %v329_v5, %v244_v9  ;;  %v656_v13 = vld [vmem:[%s1833_s6 + $0x78] sm:$0xff] }
  0xeb   :  { %1128 = vmatprep.subr.bf16.mxu1 %v634_v46  ;;  %1098 = vmatpush3.bf16.msra.mxu0 %v634_v46 }
  0xec   :  { %1136 = vmatpush3.bf16.msra.mxu1 %v634_v46 }
  0xed   :  { %v1660_v20 = vpop.permute.xlu1 %186 }
  0xee   :  { %689 = vperm.xlu1 %1174, %v647_v3   ;;  %v243_v3 = vadd.f32 %v227_v40, %v142_v7  ;;  %v229_v45 = vmul.f32 %v1567_v32, %v1660_v20 }
  0xf0   :  { %v344_v16 = vadd.f32 %v328_v11, %v243_v3  ;;  %v333_v3 = vmul.f32 %v1579_v37, %v1488_v63 }
  0xf1   :  { %v1674_v35 = vpop.permute.xlu1 %190 }
  0xf2   :  { %694 = vperm.xlu1 %1174, %v648_v2   ;;  %v479_v2 = vadd.f32 %v463_v27, %v344_v16  ;;  %v230_v43 = vmul.f32 %v1567_v32, %v1674_v35 }
  0xf4   :  { %v246_v49 = vadd.f32 %v230_v43, %v145_v42 }
  0xf6   :  { %699 = vperm.xlu1 %1174, %v649_v21   ;;  %v409_v44 = vpop.permute.xlu1 %408 }
  0xf7   :  { %v464_v51 = vmul.f32 %v1593_v48, %v409_v44 }
  0xf9   :  { %v480_v23 = vadd.f32 %v464_v51, %v345_v57  ;;  %v146_v57 = vmul.f32 %v1562_v31, %v1551_v29 }
  0xfa   :  { %704 = vperm.xlu1 %1174, %v650_v15   ;;  %v528_v50 = vpop.permute.xlu1 %527  ;;  %v144_v15 = vmul.f32 %v1562_v31, %v1540_v26  ;;  %v465_v26 = vmul.f32 %v1593_v48, %v414_v14 }
  0xfb   :  { %v589_v52 = vadd.f32 %v528_v50, %v477_v17  ;;  %v592_v18 = vadd.f32 %v543_v38, %v480_v23  ;;  %v331_v17 = vmul.f32 %v1579_v37, %v1480_v60 }
  0xfd   :  { %v605_v41 = vmax.f32 %v589_v52, 0.0  ;;  %v608_v22 = vmax.f32 %v592_v18, 0.0 }
  0xfe   :  { %709 = vperm.xlu1 %1174, %v651_v54   ;;  %v424_v54 = vpop.permute.xlu0 %423 }
  0xff   :  { %v635_v30 = vpack.c.bf16 %v606_v6, %v605_v41  ;;  %v288_v28 = vpop.permute.xlu1 %287  ;;  %v245_v6 = vadd.f32 %v229_v45, %v144_v15  ;;  %v347_v41 = vadd.f32 %v331_v17, %v246_v49 }
 0x100   :  { %v330_v50 = vmul.f32 %v1579_v37, %v288_v28 }
 0x101   :  { %1099 = vmatprep.subr.bf16.mxu0 %v635_v30  ;;  %1129 = vmatprep.subr.bf16.mxu1 %v635_v30 }
 0x102   :  { %714 = vperm.xlu1 %1174, %v652_v19   ;;  %1100 = vmatpush3.bf16.msra.mxu0 %v635_v30  ;;  %v346_v55 = vadd.f32 %v330_v50, %v245_v6  ;;  %v553_v56 = vpop.permute.xlu0 %552 }
 0x103   :  { %1137 = vmatpush3.bf16.msra.mxu1 %v635_v30 }
 0x104   :  { %v1696_v1 = vpop.permute.xlu1 %194  ;;  %v481_v20 = vadd.f32 %v465_v26, %v346_v55 }
 0x105   :  { %v231_v51 = vmul.f32 %v1567_v32, %v1696_v1  ;;  %v467_v1 = vmul.f32 %v1593_v48, %v424_v54 }
 0x106   :  { %719 = vperm.xlu1 %1174, %v653_v59   ;;  %v434_v16 = vpop.permute.xlu0 %433 }
 0x107   :  { %v247_v23 = vadd.f32 %v231_v51, %v146_v57  ;;  %v469_v17 = vmul.f32 %v1593_v48, %v434_v16  ;;  %v1177_v57 = vld [vmem:[%s1832_s5 + $0x8] sm:$0xff]   ;;  %v1181_v16 = vld [vmem:[%s1832_s5 + $0x18] sm:$0xff]  }
 0x108   :  { %v199_v46 = vpop.permute.xlu1 %198 }
 0x109   :  { %v232_v9 = vmul.f32 %v1567_v32, %v199_v46 }
 0x10a   :  { %724 = vperm.xlu1 %1174, %v654_v10   ;;  %v147_v10 = vmul.f32 %v1562_v31, %v1474_v58  ;;  %v563_v18 = vpop.permute.xlu0 %562 }
 0x10c   :  { %v248_v14 = vadd.f32 %v232_v9, %v147_v10 }
 0x10d   :  { %v419_v25 = vpop.permute.xlu1 %418 }
 0x10e   :  { %729 = vperm.xlu1 %1174, %v655_v24   ;;  %v466_v35 = vmul.f32 %v1593_v48, %v419_v25  ;;  %v349_v25 = vadd.f32 %v333_v3, %v248_v14 }
 0x110   :  { %v482_v30 = vadd.f32 %v466_v35, %v347_v41  ;;  %v337_v41 = vmul.f32 %v1579_v37, %v1503_v8 }
 0x111   :  { %v538_v47 = vpop.permute.xlu1 %537 }
 0x112   :  { %v591_v12 = vadd.f32 %v538_v47, %v479_v2  ;;  %734 = vperm.xlu1 %1174, %v656_v13   ;;  %v594_v59 = vadd.f32 %v553_v56, %v482_v30 }
 0x114   :  { %v607_v36 = vmax.f32 %v591_v12, 0.0  ;;  %v610_v60 = vmax.f32 %v594_v59, 0.0 }
 0x116   :  { %v636_v21 = vpack.c.bf16 %v608_v22, %v607_v36  ;;  %986 = vperm.xlu1 %1174, %v912_v53   ;;  %v296_v33 = vpop.permute.xlu1 %295  ;;  %v148_v22 = vmul.f32 %v1562_v31, %v1571_v34  ;;  %v151_v34 = vmul.f32 %v1562_v31, %v1492_v0  ;;  %v568_v0 = vpop.permute.xlu0 %567 }
 0x117   :  { %v332_v24 = vmul.f32 %v1579_v37, %v296_v33 }
 0x118   :  { %1101 = vmatprep.subr.bf16.mxu0 %v636_v21  ;;  %1130 = vmatprep.subr.bf16.mxu1 %v636_v21 }
 0x119   :  { %1102 = vmatpush3.bf16.msra.mxu0 %v636_v21  ;;  %1138 = vmatpush3.bf16.msra.mxu1 %v636_v21  ;;  %v348_v58 = vadd.f32 %v332_v24, %v247_v23  ;;  %v1178_v24 = vld [vmem:[%s1832_s5 + $0x28] sm:$0xff]   ;;  %v1182_v23 = vld [vmem:[%s1832_s5 + $0x38] sm:$0xff]  }
 0x11b   :  { %v203_v44 = vpop.permute.xlu1 %202  ;;  %v483_v47 = vadd.f32 %v467_v1, %v348_v58 }
 0x11c   :  { %v233_v29 = vmul.f32 %v1567_v32, %v203_v44  ;;  %v149_v44 = vmul.f32 %v1562_v31, %v1483_v61  ;;  %v150_v61 = vmul.f32 %v1562_v31, %v1583_v39 }
 0x11e   :  { %v249_v42 = vadd.f32 %v233_v29, %v148_v22 }
 0x11f   :  { %v207_v52 = vpop.permute.xlu1 %206 }
 0x120   :  { %v234_v15 = vmul.f32 %v1567_v32, %v207_v52  ;;  %v335_v52 = vmul.f32 %v1579_v37, %v1497_v4 }
 0x122   :  { %v250_v35 = vadd.f32 %v234_v15, %v149_v44 }
 0x124   :  { %v429_v19 = vpop.permute.xlu1 %428 }
 0x125   :  { %v468_v46 = vmul.f32 %v1593_v48, %v429_v19 }
 0x127   :  { %v484_v38 = vadd.f32 %v468_v46, %v349_v25  ;;  %v1179_v46 = vld [vmem:[%s1832_s5 + $0x10] sm:$0xff]  }
 0x128   :  { %v548_v62 = vpop.permute.xlu1 %547 }
 0x129   :  { %v593_v5 = vadd.f32 %v548_v62, %v481_v20  ;;  %v596_v2 = vadd.f32 %v563_v18, %v484_v38  ;;  %v351_v20 = vadd.f32 %v335_v52, %v250_v35 }
 0x12b   :  { %v609_v7 = vmax.f32 %v593_v5, 0.0  ;;  %v612_v36 = vmax.f32 %v596_v2, 0.0 }
 0x12d   :  { %v637_v40 = vpack.c.bf16 %v610_v60, %v609_v7  ;;  %v304_v28 = vpop.permute.xlu1 %303 }
 0x12e   :  { %v334_v21 = vmul.f32 %v1579_v37, %v304_v28  ;;  %v583_v28 = vpop.permute.xlu0 %582 }
 0x12f   :  { %1103 = vmatprep.subr.bf16.mxu0 %v637_v40  ;;  %1131 = vmatprep.subr.bf16.mxu1 %v637_v40 }
 0x130   :  { %1104 = vmatpush3.bf16.msra.mxu0 %v637_v40  ;;  %1139 = vmatpush3.bf16.msra.mxu1 %v637_v40  ;;  %v350_v49 = vadd.f32 %v334_v21, %v249_v42 }
 0x132   :  { %v211_v11 = vpop.permute.xlu1 %210  ;;  %v485_v6 = vadd.f32 %v469_v17, %v350_v49  ;;  %v665_v25 = vpop.permute.xlu0 %664 }
 0x133   :  { %v235_v55 = vmul.f32 %v1567_v32, %v211_v11 }
 0x134   :  { %v597_v62 = vadd.f32 %v568_v0, %v485_v6 }
 0x135   :  { %v251_v4 = vadd.f32 %v235_v55, %v150_v61 }
 0x136   :  { %v215_v27 = vpop.permute.xlu1 %214  ;;  %v613_v31 = vmax.f32 %v597_v62, 0.0  ;;  %v675_v38 = vpop.permute.xlu0 %674 }
 0x137   :  { %v236_v45 = vmul.f32 %v1567_v32, %v215_v27  ;;  %v1180_v27 = vld [vmem:[%s1832_s5 + $0x30] sm:$0xff]  }
 0x139   :  { %v252_v54 = vadd.f32 %v236_v45, %v151_v34 }
 0x13a   :  { %v922_v1 = vpop.permute.xlu0 %921 }
 0x13b   :  { %v439_v13 = vpop.permute.xlu1 %438  ;;  %v353_v56 = vadd.f32 %v337_v41, %v252_v54 }
 0x13c   :  { %v470_v30 = vmul.f32 %v1593_v48, %v439_v13 }
 0x13e   :  { %v486_v7 = vadd.f32 %v470_v30, %v351_v20  ;;  %v927_v2 = vpop.permute.xlu0 %926 }
 0x13f   :  { %v558_v63 = vpop.permute.xlu1 %557 }
 0x140   :  { %v595_v12 = vadd.f32 %v558_v63, %v483_v47 }
 0x142   :  { %v611_v53 = vmax.f32 %v595_v12, 0.0  ;;  %v932_v63 = vpop.permute.xlu0 %931 }
 0x144   :  { %v638_v33 = vpack.c.bf16 %v612_v36, %v611_v53  ;;  %v312_v43 = vpop.permute.xlu1 %311 }
 0x145   :  { %v336_v26 = vmul.f32 %v1579_v37, %v312_v43 }
 0x146   :  { %1105 = vmatprep.subr.bf16.mxu0 %v638_v33  ;;  %1132 = vmatprep.subr.bf16.mxu1 %v638_v33  ;;  %v937_v29 = vpop.permute.xlu0 %936 }
 0x147   :  { %1106 = vmatpush3.bf16.msra.mxu0 %v638_v33  ;;  %1140 = vmatpush3.bf16.msra.mxu1 %v638_v33  ;;  %v352_v60 = vadd.f32 %v336_v26, %v251_v4 }
 0x149   :  { %v444_v50 = vpop.permute.xlu1 %443 }
 0x14a   :  { %v471_v5 = vmul.f32 %v1593_v48, %v444_v50  ;;  %v1784_v36 = vpop.permute.xlu0 %941 }
 0x14c   :  { %v487_v10 = vadd.f32 %v471_v5, %v352_v60 }
 0x14d   :  { %v449_v19 = vpop.permute.xlu1 %448 }
 0x14e   :  { %v472_v59 = vmul.f32 %v1593_v48, %v449_v19  ;;  %v947_v21 = vpop.permute.xlu0 %946 }
 0x150   :  { %v488_v8 = vadd.f32 %v472_v59, %v353_v56 }
 0x151   :  { %v573_v32 = vpop.permute.xlu1 %572 }
 0x152   :  { %v598_v40 = vadd.f32 %v573_v32, %v486_v7  ;;  %v600_v9 = vadd.f32 %v583_v28, %v488_v8  ;;  %v1786_v43 = vpop.permute.xlu0 %951 }
 0x154   :  { %v614_v39 = vmax.f32 %v598_v40, 0.0  ;;  %v616_v3 = vmax.f32 %v600_v9, 0.0 }
 0x155   :  { %v578_v11 = vpop.permute.xlu1 %577 }
 0x156   :  { %v639_v37 = vpack.c.bf16 %v614_v39, %v613_v31  ;;  %v599_v51 = vadd.f32 %v578_v11, %v487_v10  ;;  %v1788_v15 = vpop.permute.xlu0 %956 }
 0x158   :  { %v615_v14 = vmax.f32 %v599_v51, 0.0  ;;  %1107 = vmatprep.subr.bf16.mxu0 %v639_v37  ;;  %1133 = vmatprep.subr.bf16.mxu1 %v639_v37 }
 0x159   :  { %1108 = vmatpush3.bf16.msra.mxu0 %v639_v37  ;;  %1141 = vmatpush3.bf16.msra.mxu1 %v639_v37  ;;  %v660_v58 = vpop.permute.xlu1 %659 }
 0x15a   :  { %v640_v48 = vpack.c.bf16 %v616_v3, %v615_v14  ;;  %v1790_v49 = vpop.permute.xlu0 %961 }
 0x15c   :  { %1109 = vmatprep.subr.bf16.mxu0 %v640_v48  ;;  %1134 = vmatprep.subr.bf16.mxu1 %v640_v48 }
 0x15d   :  { %1110 = vmatpush3.bf16.msra.mxu0 %v640_v48  ;;  %1142 = vmatpush3.bf16.msra.mxu1 %v640_v48  ;;  %v670_v13 = vpop.permute.xlu1 %669 }
 0x15e   :  { %v967_v62 = vpop.permute.xlu0 %966 }
 0x160   :  { %1112 = vmatmul.mubr.bf16.vlgmr.msra.gmra.mrb[0].mxu0 %v1177_v57  ;;  %1120 = vmatmul.mubr.bf16.vlgmr.msra.gmra.mrb[0].mxu1 %v1178_v24 }
 0x161   :  { %1115 = vmatprep.mubr.bf16.mxu0 %v1179_v46  ;;  %1123 = vmatprep.mubr.bf16.mxu1 %v1180_v27  ;;  %v917_v18 = vpop.permute.xlu1 %916 }
 0x165   :  { %v680_v47 = vpop.permute.xlu1 %679 }
 0x168   :  { %1116 = vmatmul.mubr.bf16.gmra.mrb[4].mxu0 %v1181_v16  ;;  %1124 = vmatmul.mubr.bf16.gmra.mrb[4].mxu1 %v1182_v23 }
 0x169   :  { %v685_v12 = vpop.permute.xlu1 %684 }
 0x16d   :  { %v690_v53 = vpop.permute.xlu1 %689 }
 0x171   :  { %v695_v22 = vpop.permute.xlu1 %694 }
 0x175   :  { %v700_v33 = vpop.permute.xlu1 %699 }
 0x179   :  { %v705_v42 = vpop.permute.xlu1 %704 }
 0x17d   :  { %v710_v45 = vpop.permute.xlu1 %709 }
 0x181   :  { %v715_v44 = vpop.permute.xlu1 %714 }
 0x185   :  { %v720_v4 = vpop.permute.xlu1 %719 }
 0x189   :  { %v725_v23 = vpop.permute.xlu1 %724 }
 0x233   :  { %v1113_v34 = vpop.f32.mrb[0].mxu0  ;;  %v1121_v17 = vpop.f32.mrb[0].mxu1 }
 0x234   :  { %v828_v50 = vadd.f32 %v1113_v34, %v670_v13  ;;  %v819_v35 = vpop.f32.mrb[1].mxu0  ;;  %v851_v54 = vpop.f32.mrb[1].mxu1 }
 0x235   :  { %v820_v6 = vadd.f32 %v819_v35, %v660_v58  ;;  %v1114_v52 = vpop.f32.mrb[2].mxu0  ;;  %v1122_v41 = vpop.f32.mrb[2].mxu1  ;;  %v852_v51 = vadd.f32 %v851_v54, %v700_v33 }
 0x236   :  { %v831_v55 = vadd.f32 %v1114_v52, %v675_v38  ;;  %v822_v30 = vpop.f32.mrb[3].mxu0  ;;  %v854_v61 = vpop.f32.mrb[3].mxu1  ;;  %v884_v0 = vmax.f32 %v828_v50, 0.0  ;;  %v863_v35 = vadd.f32 %v1122_v41, %v715_v44 }
 0x237   :  { %v882_v19 = vmax.f32 %v820_v6, 0.0  ;;  %v823_v26 = vadd.f32 %v822_v30, %v665_v25  ;;  %v855_v58 = vadd.f32 %v854_v61, %v705_v42  ;;  %v730_v6 = vpop.permute.xlu1 %729 }
 0x238   :  { %v885_v59 = vmax.f32 %v831_v55, 0.0  ;;  %v996_v5 = vmul.f32 %v927_v2, %v884_v0  ;;  %v972_v2 = vpop.permute.xlu0 %971  ;;  %v893_v61 = vmax.f32 %v863_v35, 0.0 }
 0x239   :  { %v994_v56 = vmul.f32 %v917_v18, %v882_v19  ;;  %v883_v20 = vmax.f32 %v823_v26, 0.0 }
 0x23a   :  { %v997_v31 = vmul.f32 %v932_v63, %v885_v59  ;;  %v1014_v24 = vsel %vm1010_vm0, %v996_v5, 0.0 }
 0x23b   :  { %v995_v8 = vmul.f32 %v922_v1, %v883_v20  ;;  %v1117_v7 = vpop.f32.mrb[4].mxu0  ;;  %v1125_v32 = vpop.f32.mrb[4].mxu1  ;;  %v1011_v9 = vsel %vm1010_vm0, %v994_v56, 0.0 }
 0x23c   :  { %v844_v60 = vadd.f32 %v1117_v7, %v690_v53  ;;  %v835_v40 = vpop.f32.mrb[5].mxu0  ;;  %v867_v28 = vpop.f32.mrb[5].mxu1  ;;  %v1016_v38 = vsel %vm1010_vm0, %v997_v31, 0.0  ;;  %v890_v53 = vmax.f32 %v852_v51, 0.0  ;;  %v876_v26 = vadd.f32 %v1125_v32, %v730_v6 }
 0x23d   :  { %v1012_v39 = vsel %vm1010_vm0, %v995_v8, 0.0  ;;  %v836_v10 = vadd.f32 %v835_v40, %v680_v47  ;;  %v1118_v11 = vpop.f32.mrb[6].mxu0  ;;  %v1126_v37 = vpop.f32.mrb[6].mxu1  ;;  %v860_v47 = vadd.f32 %v1121_v17, %v710_v45  ;;  %v868_v17 = vadd.f32 %v867_v28, %v720_v4 }
 0x23e   :  { %v1013_v14 = vadd.f32 %v1012_v39, %v1011_v9  ;;  %v847_v3 = vadd.f32 %v1118_v11, %v695_v22  ;;  %v838_v48 = vpop.f32.mrb[7].mxu0  ;;  %v870_v57 = vpop.f32.mrb[7].mxu1  ;;  %v888_v46 = vmax.f32 %v844_v60, 0.0  ;;  %v1002_v55 = vmul.f32 %v1788_v15, %v890_v53 }
 0x23f   :  { %v886_v27 = vmax.f32 %v836_v10, 0.0  ;;  %v839_v16 = vadd.f32 %v838_v48, %v685_v12  ;;  %v891_v12 = vmax.f32 %v855_v58, 0.0  ;;  %v892_v52 = vmax.f32 %v860_v47, 0.0  ;;  %v735_v59 = vpop.permute.xlu1 %734 }
 0x240   :  { %v1015_v25 = vadd.f32 %v1014_v24, %v1013_v14  ;;  %v889_v1 = vmax.f32 %v847_v3, 0.0  ;;  %v1000_v22 = vmul.f32 %v947_v21, %v888_v46  ;;  %v977_v21 = vpop.permute.xlu0 %976  ;;  %v871_v41 = vadd.f32 %v870_v57, %v725_v23 }
 0x241   :  { %v998_v13 = vmul.f32 %v937_v29, %v886_v27  ;;  %v887_v18 = vmax.f32 %v839_v16, 0.0  ;;  %v1026_v19 = vsel %vm1010_vm0, %v1002_v55, 0.0  ;;  %v894_v56 = vmax.f32 %v868_v17, 0.0 }
 0x242   :  { %v1017_v63 = vadd.f32 %v1016_v38, %v1015_v25  ;;  %v1001_v54 = vmul.f32 %v1786_v43, %v889_v1  ;;  %v1022_v45 = vsel %vm1010_vm0, %v1000_v22, 0.0  ;;  %v1004_v43 = vmul.f32 %v967_v62, %v892_v52 }
 0x243   :  { %v1018_v33 = vsel %vm1010_vm0, %v998_v13, 0.0  ;;  %v999_v34 = vmul.f32 %v1784_v36, %v887_v18  ;;  %v1003_v36 = vmul.f32 %v1790_v49, %v891_v12  ;;  %v1005_v15 = vmul.f32 %v972_v2, %v893_v61  ;;  %v987_v32 = vpop.permute.xlu1 %986 }
 0x244   :  { %v1019_v50 = vadd.f32 %v1018_v33, %v1017_v63  ;;  %v1024_v44 = vsel %vm1010_vm0, %v1001_v54, 0.0  ;;  %v879_v4 = vadd.f32 %v1126_v37, %v735_v59  ;;  %v895_v8 = vmax.f32 %v871_v41, 0.0  ;;  %v982_v7 = vpop.permute.xlu0 %981 }
 0x245   :  { %v1020_v42 = vsel %vm1010_vm0, %v999_v34, 0.0  ;;  %v1028_v5 = vsel %vm1010_vm0, %v1003_v36, 0.0  ;;  %v1030_v49 = vsel %vm1010_vm0, %v1004_v43, 0.0  ;;  %v896_v40 = vmax.f32 %v876_v26, 0.0 }
 0x246   :  { %v1021_v29 = vadd.f32 %v1020_v42, %v1019_v50  ;;  %v1006_v28 = vmul.f32 %v977_v21, %v894_v56  ;;  %v1032_v62 = vsel %vm1010_vm0, %v1005_v15, 0.0  ;;  %v897_v31 = vmax.f32 %v879_v4, 0.0 }
 0x247   :  { %v1007_v39 = vmul.f32 %v982_v7, %v895_v8  ;;  %v1008_v11 = vmul.f32 %v987_v32, %v896_v40  ;;  %v1049_v1 = vstv %s1835_s8 }
 0x248   :  { %v1023_v30 = vadd.f32 %v1022_v45, %v1021_v29  ;;  %v1034_v51 = vsel %vm1010_vm0, %v1006_v28, 0.0  ;;  %v992_v14 = vpop.permute.xlu0 %991 }
 0x249   :  { %v1009_v37 = vmul.f32 %v992_v14, %v897_v31  ;;  %v1036_v48 = vsel %vm1010_vm0, %v1007_v39, 0.0  ;;  %v1038_v24 = vsel %vm1010_vm0, %v1008_v11, 0.0 }
 0x24a   :  { %v1025_v0 = vadd.f32 %v1024_v44, %v1023_v30 }
 0x24b   :  { %v1040_v27 = vsel %vm1010_vm0, %v1009_v37, 0.0 }
 0x24c   :  { %v1027_v20 = vadd.f32 %v1026_v19, %v1025_v0 }
 0x24e   :  { %v1029_v60 = vadd.f32 %v1028_v5, %v1027_v20 }
 0x250   :  { %v1031_v9 = vadd.f32 %v1030_v49, %v1029_v60 }
 0x252   :  { %v1033_v10 = vadd.f32 %v1032_v62, %v1031_v9 }
 0x254   :  { %v1035_v3 = vadd.f32 %v1034_v51, %v1033_v10 }
 0x256   :  { %v1037_v57 = vadd.f32 %v1036_v48, %v1035_v3 }
 0x258   :  { %v1039_v46 = vadd.f32 %v1038_v24, %v1037_v57 }
 0x25a   :  { %v1041_v16 = vadd.f32 %v1040_v27, %v1039_v46 }
 0x25c   :  { %v1042_v23 = vrot.slane %v1041_v16, 4 }
 0x25e   :  { %v1043_v25 = vadd.f32 %v1042_v23, %v1041_v16 }
 0x260   :  { %v1044_v58 = vrot.slane %v1043_v25, 2 }
 0x262   :  { %v1045_v38 = vadd.f32 %v1044_v58, %v1043_v25 }
 0x264   :  { %v1046_v13 = vrot.slane %v1045_v38, 1 }
 0x266   :  { %v1047_v18 = vadd.f32 %v1046_v13, %v1045_v38 }
 0x268   :  { %v1050_v2 = vadd.f32 %v1049_v1, %v1047_v18 }
 0x26a   :  { %1052 = vst.msk [vmem:[#allocation3] sm:$0x1] %vm1051_vm1, %v1050_v2 }
 0x26b   :  { %1194 = shalt.err (!%p1191_p4)
}
 0x26c   :  { %s1195_s12 = scalar_lea.hbm %s1836_s9, 16 }
 0x26d   :  { %p1196_p5 = scmp.ne.s32.totalorder %s1836_s9, %s1195_s12  ;;  %p1199_p6 = scmp.lt.u32.totalorder %s1195_s12, %s1836_s9 }
 0x26f   :  { %p1201_p7 = pnand %p1199_p6, %p1196_p5 }
 0x271   :  { %1204 = shalt.err (!%p1201_p7)
}
 0x272   :  { %1062 = dma.vmem_to_hbm [thread:$0]  %s1060_s29, 16, %s1836_s9, [#allocation4]  }
 0x273   :  { %1205 = dma.done.wait [#allocation4], 16  }
 0x274   :  { %1206 = vsyncadd [#allocation4], 4294967280 }
 0x275   :  { %1066 = vsyncpa [#allocation4], 1 }

</bundles_post_ra>
